<compile_context>
chip_gen: v7x
topology: tpu7x:2x2x1
jax: 0.10.0
libtpu: 0.0.40
codegen_flags: <defaults>
</compile_context>

<pallas_src>
import functools

import jax
import jax.numpy as jnp
from jax.experimental import pallas as pl
from jax.experimental.pallas import tpu as pltpu


def _round_up(x: int, m: int) -> int:
    return ((x + m - 1) // m) * m


def _pad2d(a, rows, cols):
    """Zero-pad a 2-D array up to (rows, cols). No-op if already that shape."""
    r, c = a.shape
    if r == rows and c == cols:
        return a
    return jnp.pad(a, ((0, rows - r), (0, cols - c)))


# ---------------------------------------------------------------------------
# Kernels
# ---------------------------------------------------------------------------
def _linear_relu_kernel_single_k(x_ref, w_ref, b_ref, o_ref):
    """K fits in one tile: fused matmul + bias + ReLU, no accumulator scratch."""
    y = jnp.dot(x_ref[...], w_ref[...], preferred_element_type=jnp.float32)
    y = y + b_ref[...]                       # (1, tn) broadcasts over rows
    o_ref[...] = jnp.maximum(y, 0.0).astype(o_ref.dtype)


def _linear_relu_kernel_acc(x_ref, w_ref, b_ref, o_ref, acc_ref):
    """General M/N/K grid with f32 VMEM accumulator; epilogue on last K step."""
    k = pl.program_id(2)

    @pl.when(k == 0)
    def _():
        acc_ref[...] = jnp.zeros_like(acc_ref)

    acc_ref[...] += jnp.dot(
        x_ref[...], w_ref[...], preferred_element_type=jnp.float32
    )

    @pl.when(k == pl.num_programs(2) - 1)
    def _():
        y = acc_ref[...] + b_ref[...]        # (1, tn) broadcasts over rows
        o_ref[...] = jnp.maximum(y, 0.0).astype(o_ref.dtype)


# ---------------------------------------------------------------------------
# Wrapper
# ---------------------------------------------------------------------------
@functools.partial(jax.jit, static_argnames=("tile_b", "tile_n", "tile_k"))
def linear_relu(x, w, b, *, tile_b=None, tile_n=None, tile_k=None):
    """y = ReLU(x @ w.T + b).

    x: (B, inp); w: (out, inp) (PyTorch nn.Linear layout); b: (out,).
    Returns (B, out) with x's dtype.
    """
    B, K = x.shape
    N, K_w = w.shape
    assert K == K_w, "weight inner dim must match input features"
    assert b.shape == (N,)

    # ---- tile selection (bf16 operands: sublane pack of 16; lanes of 128) ----
    if tile_b is None:
        tile_b = min(256, _round_up(B, 16))
    if tile_n is None:
        tile_n = min(256, _round_up(N, 128))
    if tile_k is None:
        tile_k = min(512, _round_up(K, 128))
    assert tile_b % 16 == 0 and tile_n % 128 == 0 and tile_k % 128 == 0

    pad_B = _round_up(B, tile_b)
    pad_N = _round_up(N, tile_n)
    pad_K = _round_up(K, tile_k)

    # ---- one-time layout prep (cheap XLA ops outside the kernel) ----
    # Pre-transpose the weight to (K, N): MXU-native, output lands lane-dense.
    x_p = _pad2d(x.astype(jnp.bfloat16), pad_B, pad_K)
    w_p = _pad2d(jnp.transpose(w).astype(jnp.bfloat16), pad_K, pad_N)
    b_p = _pad2d(b.astype(jnp.float32)[None, :], 1, pad_N)

    cost = pl.CostEstimate(
        flops=2 * pad_B * pad_K * pad_N,
        transcendentals=0,
        bytes_accessed=(pad_B * pad_K * 2          # x (bf16)
                        + pad_K * pad_N * 2        # w (bf16)
                        + pad_N * 4                # bias (f32)
                        + pad_B * pad_N * 4),      # y (f32)
    )

    n_k_tiles = pad_K // tile_k

    if n_k_tiles == 1:
        # Fast path: single K pass, no accumulator scratch, 2-D parallel grid.
        out_p = pl.pallas_call(
            _linear_relu_kernel_single_k,
            out_shape=jax.ShapeDtypeStruct((pad_B, pad_N), jnp.float32),
            grid_spec=pltpu.PrefetchScalarGridSpec(
                num_scalar_prefetch=0,
                grid=(pad_B // tile_b, pad_N // tile_n),
                in_specs=[
                    pl.BlockSpec((tile_b, pad_K), lambda i, j: (i, 0)),  # x
                    pl.BlockSpec((pad_K, tile_n), lambda i, j: (0, j)),  # W^T
                    pl.BlockSpec((1, tile_n), lambda i, j: (0, j)),      # bias
                ],
                out_specs=pl.BlockSpec((tile_b, tile_n), lambda i, j: (i, j)),
            ),
            compiler_params=pltpu.CompilerParams(
                dimension_semantics=("parallel", "parallel"),
            ),
            cost_estimate=cost,
        )(x_p, w_p, b_p)
    else:
        # General path: M/N/K grid, f32 accumulator, K last ("arbitrary").
        out_p = pl.pallas_call(
            _linear_relu_kernel_acc,
            out_shape=jax.ShapeDtypeStruct((pad_B, pad_N), jnp.float32),
            grid_spec=pltpu.PrefetchScalarGridSpec(
                num_scalar_prefetch=0,
                grid=(pad_B // tile_b, pad_N // tile_n, n_k_tiles),
                in_specs=[
                    pl.BlockSpec((tile_b, tile_k), lambda i, j, k: (i, k)),  # x
                    pl.BlockSpec((tile_k, tile_n), lambda i, j, k: (k, j)),  # W^T
                    pl.BlockSpec((1, tile_n), lambda i, j, k: (0, j)),       # bias
                ],
                out_specs=pl.BlockSpec((tile_b, tile_n), lambda i, j, k: (i, j)),
                scratch_shapes=[pltpu.VMEM((tile_b, tile_n), jnp.float32)],
            ),
            compiler_params=pltpu.CompilerParams(
                dimension_semantics=("parallel", "parallel", "arbitrary"),
            ),
            cost_estimate=cost,
        )(x_p, w_p, b_p)

    return out_p[:B, :N].astype(x.dtype)


if __name__ == "__main__":
    key = jax.random.PRNGKey(0)
    k_x, k_w, k_b = jax.random.split(key, 3)

    B, inp, out = 8, 32, 64  # small shapes consistent with Linear(inp, out)

    x = jax.random.normal(k_x, (B, inp), dtype=jnp.float32)
    # Deterministic init mimicking nn.Linear's uniform(-1/sqrt(inp), 1/sqrt(inp))
    bound = 1.0 / jnp.sqrt(jnp.float32(inp))
    w = jax.random.uniform(k_w, (out, inp), dtype=jnp.float32,
                           minval=-bound, maxval=bound)
    b = jax.random.uniform(k_b, (out,), dtype=jnp.float32,
                           minval=-bound, maxval=bound)

    y = linear_relu(x, w, b)
    y = jax.block_until_ready(y)
    assert y.shape == (B, out)

    # Reference with the same bf16-operand / f32-accumulate numerics.
    x_bf = x.astype(jnp.bfloat16).astype(jnp.float32)
    w_bf = w.astype(jnp.bfloat16).astype(jnp.float32)
    y_ref_bf16 = jnp.maximum(x_bf @ w_bf.T + b, 0.0)
    assert jnp.allclose(y, y_ref_bf16, atol=1e-4, rtol=1e-4)

    # Looser check against the pure-f32 reference (bf16 rounding of operands).
    y_ref_f32 = jnp.maximum(x @ w.T + b, 0.0)
    assert jnp.allclose(y, y_ref_f32, atol=3e-2, rtol=3e-2)

    # Also exercise the multi-K accumulator path with a larger contraction dim.
    K2, N2, B2 = 384, 256, 64
    x2 = jax.random.normal(k_x, (B2, K2), dtype=jnp.float32)
    w2 = jax.random.normal(k_w, (N2, K2), dtype=jnp.float32) * 0.05
    b2 = jax.random.normal(k_b, (N2,), dtype=jnp.float32) * 0.05
    y2 = jax.block_until_ready(linear_relu(x2, w2, b2, tile_k=128))
    x2_bf = x2.astype(jnp.bfloat16).astype(jnp.float32)
    w2_bf = w2.astype(jnp.bfloat16).astype(jnp.float32)
    y2_ref = jnp.maximum(x2_bf @ w2_bf.T + b2, 0.0)
    assert jnp.allclose(y2, y2_ref, atol=1e-2, rtol=1e-2)

    print("KERNEL_OK")
</pallas_src>

<mosaic_0001>
module attributes {stable_mosaic.version = 11 : i64} {
  func.func @_linear_relu_kernel_single_k(%arg0: i32, %arg1: i32, %arg2: memref<16x128xbf16, #tpu.memory_space<vmem>>, %arg3: memref<128x128xbf16, #tpu.memory_space<vmem>>, %arg4: memref<1x128xf32, #tpu.memory_space<vmem>>, %arg5: memref<16x128xf32, #tpu.memory_space<vmem>>) attributes {dimension_semantics = [#tpu.dimension_semantics<parallel>, #tpu.dimension_semantics<parallel>], iteration_bounds = array<i64: 1, 1>, scalar_prefetch = 0 : i64, scratch_operands = 0 : i64, tpu.core_type = #tpu.core_type<tc>, window_params = [{transform_indices = @transform_0, window_bounds = array<i64: 16, 128>}, {transform_indices = @transform_1, window_bounds = array<i64: 128, 128>}, {transform_indices = @transform_2, window_bounds = array<i64: 1, 128>}, {transform_indices = @transform_3, window_bounds = array<i64: 16, 128>}]} {
    %c0 = arith.constant 0 : index
    %c0_0 = arith.constant 0 : index
    %0 = vector.load %arg2[%c0, %c0_0] : memref<16x128xbf16, #tpu.memory_space<vmem>>, vector<16x128xbf16>
    %c0_1 = arith.constant 0 : index
    %c0_2 = arith.constant 0 : index
    %1 = vector.load %arg3[%c0_1, %c0_2] : memref<128x128xbf16, #tpu.memory_space<vmem>>, vector<128x128xbf16>
    %cst = arith.constant dense<0.000000e+00> : vector<16x128xf32>
    %2 = tpu.matmul %0, %1, %cst {dimension_numbers = #tpu.dot_dimension_numbers<[1], [0], [0], [1], [0, 0, 1, 1], [], []>} : vector<16x128xbf16>, vector<128x128xbf16>, vector<16x128xf32> -> vector<16x128xf32>
    %c0_3 = arith.constant 0 : index
    %c0_4 = arith.constant 0 : index
    %3 = vector.load %arg4[%c0_3, %c0_4] : memref<1x128xf32, #tpu.memory_space<vmem>>, vector<1x128xf32>
    %4 = vector.broadcast %3 : vector<1x128xf32> to vector<16x128xf32>
    %5 = arith.addf %2, %4 : vector<16x128xf32>
    %cst_5 = arith.constant 0.000000e+00 : f32
    %6 = vector.broadcast %cst_5 : f32 to vector<16x128xf32>
    %7 = arith.maximumf %5, %6 : vector<16x128xf32>
    %c0_6 = arith.constant 0 : index
    %c0_7 = arith.constant 0 : index
    %8 = vector.load %arg5[%c0_6, %c0_7] : memref<16x128xf32, #tpu.memory_space<vmem>>, vector<16x128xf32>
    tpu.vector_store %arg5[%c0_6, %c0_7], %7 {strides = array<i32>} : memref<16x128xf32, #tpu.memory_space<vmem>>, vector<16x128xf32>,
    return
  }
  func.func @transform_0(%arg0: i32, %arg1: i32) -> (i32, i32) {
    %c0_i32 = arith.constant 0 : i32
    %c0_i32_0 = arith.constant 0 : i32
    return %arg0, %c0_i32 : i32, i32
  }
  func.func @transform_1(%arg0: i32, %arg1: i32) -> (i32, i32) {
    %c0_i32 = arith.constant 0 : i32
    %c0_i32_0 = arith.constant 0 : i32
    return %c0_i32, %arg1 : i32, i32
  }
  func.func @transform_2(%arg0: i32, %arg1: i32) -> (i32, i32) {
    %c0_i32 = arith.constant 0 : i32
    %c0_i32_0 = arith.constant 0 : i32
    return %c0_i32, %arg1 : i32, i32
  }
  func.func @transform_3(%arg0: i32, %arg1: i32) -> (i32, i32) {
    %c0_i32 = arith.constant 0 : i32
    return %arg0, %arg1 : i32, i32
  }
}

</mosaic_0001>

<bundles_post_ra>
// kernel: linear_relu.1
= control target key start
LH: loop header
LB: loop body
LE: loop exit
PB: predicated region body
PF: predicated region fallthrough
CT: control target
= control target key end

     0   :  { %v193_v0 = vmov 0.0   ;;  %vm194_vm0 = vmmov 0   ;;  %s251_s1 = inlined_call_operand.vmem [shape: bf16[128,128], index: 1, kind: input, shape index: {}]   ;;  %s252_s0 = inlined_call_operand.vmem [shape: bf16[16,128], index: 0, kind: input, shape index: {}]   ;;  %s253_s2 = inlined_call_operand.vmem [shape: f32[1,128], index: 2, kind: input, shape index: {}]   ;;  %s254_s3 = inlined_call_operand.vmem [shape: f32[16,128], index: 3, kind: output, shape index: {}]  }
   0x1   :  { %162 = vmatprep.subr.bf16.mxu0 %v193_v0  ;;  %v184_v1 = vld [vmem:[%s251_s1] sm:$0xff]   ;;  %178 = vmatprep.mubr.msk.bf16.mxu0 %vm194_vm0, %v193_v0  ;;  %v185_v2 = vld [vmem:[%s251_s1 + $0x8] sm:$0xff]   ;;  %v186_v3 = vld [vmem:[%s251_s1 + $0x10] sm:$0xff]  }
   0x2   :  { %163 = vmatpush3.bf16.msra.mxu0 %v184_v1  ;;  %v187_v4 = vld [vmem:[%s251_s1 + $0x18] sm:$0xff]   ;;  %v188_v5 = vld [vmem:[%s251_s1 + $0x20] sm:$0xff]   ;;  %v189_v6 = vld [vmem:[%s251_s1 + $0x28] sm:$0xff]  }
   0x3   :  { %164 = vmatprep.subr.bf16.mxu0 %v193_v0  ;;  %v190_v7 = vld [vmem:[%s251_s1 + $0x30] sm:$0xff]   ;;  %v191_v8 = vld [vmem:[%s251_s1 + $0x38] sm:$0xff]   ;;  %v192_v9 = vld [vmem:[%s252_s0] sm:$0xff]  }
   0x4   :  { %v143_v10 = vld [vmem:[%s253_s2] ss:$0 sm:$0xff] }
   0x6   :  { %165 = vmatpush3.bf16.msra.mxu0 %v185_v2 }
   0x7   :  { %166 = vmatprep.subr.bf16.mxu0 %v193_v0 }
   0xa   :  { %167 = vmatpush3.bf16.msra.mxu0 %v186_v3 }
   0xb   :  { %168 = vmatprep.subr.bf16.mxu0 %v193_v0 }
   0xe   :  { %169 = vmatpush3.bf16.msra.mxu0 %v187_v4 }
   0xf   :  { %170 = vmatprep.subr.bf16.mxu0 %v193_v0 }
  0x12   :  { %171 = vmatpush3.bf16.msra.mxu0 %v188_v5 }
  0x13   :  { %172 = vmatprep.subr.bf16.mxu0 %v193_v0 }
  0x16   :  { %173 = vmatpush3.bf16.msra.mxu0 %v189_v6 }
  0x17   :  { %174 = vmatprep.subr.bf16.mxu0 %v193_v0 }
  0x1a   :  { %175 = vmatpush3.bf16.msra.mxu0 %v190_v7 }
  0x1b   :  { %176 = vmatprep.subr.bf16.mxu0 %v193_v0 }
  0x1e   :  { %177 = vmatpush3.bf16.msra.mxu0 %v191_v8 }
  0x21   :  { %179 = vmatmul.mubr.bf16.vlgmr.msra.gmra.mrb[0].mxu0 %v192_v9 }
  0xf4   :  { %v128_v11 = vpop.f32.mrb[0].mxu0 }
  0xf5   :  { %v129_v12 = vadd.f32 %v143_v10, %v128_v11  ;;  %v180_v13 = vpop.f32.mrb[1].mxu0 }
  0xf6   :  { %v131_v14 = vpop.f32.mrb[2].mxu0 }
  0xf7   :  { %v135_v15 = vmax.f32 %v129_v12, 0.0  ;;  %v132_v16 = vadd.f32 %v143_v10, %v131_v14  ;;  %v181_v17 = vpop.f32.mrb[3].mxu0 }
  0xf9   :  { %137 = vst [vmem:[%s254_s3] sm:$0xff] %v135_v15  ;;  %v136_v18 = vmax.f32 %v132_v16, 0.0 }
  0xfb   :  { %138 = vst [vmem:[%s254_s3 + $0x8] sm:$0xff] %v136_v18 }

</bundles_post_ra>
